<compile_context>
chip_gen: v7x
topology: tpu7x:2x2x1
jax: 0.10.0
libtpu: 0.0.40
codegen_flags: <defaults>
</compile_context>

<pallas_src>
import functools

import jax
import jax.numpy as jnp
from jax import lax
from jax.experimental import pallas as pl
from jax.experimental.pallas import tpu as pltpu

EPS = 1e-5

_VMEM = pl.BlockSpec(memory_space=pltpu.MemorySpace.VMEM)
_SMEM = pl.BlockSpec(memory_space=pltpu.MemorySpace.SMEM)


def _pick_vmem_limit():
    """Generation-aware VMEM limit: ~half of physical VMEM, clamped to a sane range."""
    phys = None
    try:
        info = pltpu.get_tpu_info()
        phys = getattr(info, "vmem_capacity_bytes", None)
    except Exception:
        phys = None
    if not phys:
        phys = 64 * 1024 * 1024  # conservative default (v7x per-TensorCore VMEM)
    return int(max(32 * 1024 * 1024, min(phys // 2, 96 * 1024 * 1024)))


def _gcn_fused_kernel(x_ref, adj_ref, alpha_ref,
                      dbn_gamma_ref, dbn_beta_ref,
                      wblk_ref, conv_b_ref,
                      bn_gamma_ref, bn_beta_ref,
                      selfc_ref, pool_ref, fc_b_ref,
                      o_ref, *, n_frames):
    # x_ref: (N*M, V, T*C), lane index = t*C + c (t-major, c-minor).
    NM, V, TC = x_ref.shape
    M = dbn_gamma_ref.shape[0]
    N = NM // M
    T = n_frames
    C = TC // T
    TO = wblk_ref.shape[1]  # == TC on the identity-residual path (O == C)

    x = x_ref[...]                                                      # (NM, V, TC)

    # 0/1 per-channel selectors built in-kernel (no HBM input, no in-kernel transpose):
    #   sel [t*C + c, c'] = [c == c']   (TC, C)
    #   selT[c', t*C + c] = [c == c']   (C, TC)
    # Since O == C they also serve as the (TO, O) / (O, TO) selectors for the conv output.
    sel = (lax.broadcasted_iota(jnp.int32, (TC, C), 0) % C
           == lax.broadcasted_iota(jnp.int32, (TC, C), 1)).astype(jnp.float32)
    selT = (lax.broadcasted_iota(jnp.int32, (C, TC), 0)
            == lax.broadcasted_iota(jnp.int32, (C, TC), 1) % C).astype(jnp.float32)

    # ---- data_bn: BatchNorm1d over (m, v, c) channels, batch stats over (n, t) ----
    # t-segment reductions are lane-dense MXU matmuls against `sel`; the n reduction
    # is plain vreg adds over the leading axis (no XLU sublane reduce).
    inv_nt = 1.0 / float(N * T)
    xsum = lax.dot_general(x, sel, (((2,), (0,)), ((), ())),
                           preferred_element_type=jnp.float32)          # (NM, V, C)
    mean = jnp.sum(xsum.reshape(N, M, V, C), axis=0) * inv_nt           # (M, V, C)
    mean_tc = lax.dot_general(mean, selT, (((2,), (0,)), ((), ())),
                              preferred_element_type=jnp.float32)       # (M, V, TC)
    xc = x.reshape(N, M, V, TC) - mean_tc[None]                         # centered
    sq = jnp.sum(xc * xc, axis=0)                                       # (M, V, TC)
    var = jnp.maximum(
        lax.dot_general(sq, sel, (((2,), (0,)), ((), ())),
                        preferred_element_type=jnp.float32) * inv_nt, 0.0)   # (M, V, C)
    var_tc = lax.dot_general(var, selT, (((2,), (0,)), ((), ())),
                             preferred_element_type=jnp.float32)        # (M, V, TC)
    scale_tc = dbn_gamma_ref[...] * lax.rsqrt(var_tc + EPS)             # (M, V, TC)
    x_bn = (xc * scale_tc[None] + dbn_beta_ref[...][None]).reshape(NM, V, TC)

    # ---- adjacency (pre-transposed on host): adj^T + alpha * I ----
    alpha = alpha_ref[0]
    eye = (lax.broadcasted_iota(jnp.int32, (V, V), 0)
           == lax.broadcasted_iota(jnp.int32, (V, V), 1)).astype(jnp.float32)
    adj_e = adj_ref[...] + alpha * eye[None]                            # (NM, V, V)

    # ---- graph aggregation: xw[nm, w, tc] = sum_v adj[nm, v, w] * x_bn[nm, v, tc] ----
    xw = lax.dot_general(adj_e, x_bn, (((2,), (1,)), ((0,), (0,))),
                         preferred_element_type=jnp.float32)            # (NM, V, TC)

    # ---- 1x1 conv, staying in TC lanes, via block-diagonal kron(I_T, conv_w^T) ----
    z = lax.dot_general(xw, wblk_ref[...], (((2,), (0,)), ((), ())),
                        preferred_element_type=jnp.float32)             # (NM, V, TO)
    z = z + conv_b_ref[...]                                             # (1, TO) bcast

    # ---- BatchNorm2d (training batch stats over (nm, v, t), per out-channel) ----
    # V-sublane reduction via a ones-row MXU matmul; t-segments via `sel`.
    inv_cnt = 1.0 / float(NM * V * T)
    ones_v = jnp.ones((1, V), dtype=jnp.float32)
    zsum = lax.dot_general(ones_v, jnp.sum(z, axis=0), (((1,), (0,)), ((), ())),
                           preferred_element_type=jnp.float32)          # (1, TO)
    mean_o = lax.dot_general(zsum, sel, (((1,), (0,)), ((), ())),
                             preferred_element_type=jnp.float32) * inv_cnt   # (1, O)
    mean_to = lax.dot_general(mean_o, selT, (((1,), (0,)), ((), ())),
                              preferred_element_type=jnp.float32)       # (1, TO)
    zd = z - mean_to                                                    # centered
    vsum = lax.dot_general(ones_v, jnp.sum(zd * zd, axis=0), (((1,), (0,)), ((), ())),
                           preferred_element_type=jnp.float32)          # (1, TO)
    var_o = jnp.maximum(
        lax.dot_general(vsum, sel, (((1,), (0,)), ((), ())),
                        preferred_element_type=jnp.float32) * inv_cnt, 0.0)  # (1, O)
    inv_to = lax.dot_general(lax.rsqrt(var_o + EPS), selT, (((1,), (0,)), ((), ())),
                             preferred_element_type=jnp.float32)        # (1, TO)
    y = zd * (inv_to * bn_gamma_ref[...]) + bn_beta_ref[...]            # (NM, V, TO)

    # ---- identity residual (in == out channels so TO == TC) + ReLU ----
    y = jnp.maximum(y + xw, 0.0)

    # ---- global mean pool over (m, v, t) fused with the final Linear (2 matmuls) ----
    # selfc = tile(fc_w^T, T) folds the t-segment sum into the fc contraction.
    yt = lax.dot_general(y, selfc_ref[...], (((2,), (0,)), ((), ())),
                         preferred_element_type=jnp.float32)            # (NM, V, n_way)
    # V is the sublane tile, so this reshape is layout-preserving for V % 8 == 0.
    yt2 = yt.reshape(NM * V, selfc_ref.shape[1])
    out = lax.dot_general(pool_ref[...], yt2, (((1,), (0,)), ((), ())),
                          preferred_element_type=jnp.float32)           # (N, n_way)
    o_ref[...] = (out + fc_b_ref[...]).astype(o_ref.dtype)


def gcn_forward(x, adj, params):
    """x: (N, C, T, V, M) float32; adj: (N*M, V, V) float32 -> (N, n_way)."""
    N, C, T, V, M = x.shape
    O, Cin = params["conv_w"].shape
    n_way = params["fc_w"].shape[0]
    assert Cin == C and O == C, "identity residual path requires in==out channels"
    # TODO(synk): in_channels != out_channels `down = Conv2d+BatchNorm2d` branch is not
    # implemented (module is exercised with the identity residual here).
    # TODO(synk): for large N*M*T, switch to a gridded two-pass variant (stats accumulate
    # over an NM grid axis with BlockSpec index_maps, then apply) with
    # dimension_semantics=("parallel", ...) so v7x's second TensorCore is used, and cast
    # the aggregation / conv matmul operands to bf16 (f32 accumulate) on v5e/v6e.

    # Single host relayout: (N, C, T, V, M) -> (N*M, V, T*C); lane axis = T*C.
    x_k = jnp.transpose(x, (0, 4, 3, 2, 1)).reshape(N * M, V, T * C)
    # Pre-transpose the adjacency so the in-kernel contraction is row-by-column.
    adj_t = jnp.transpose(adj, (0, 2, 1))

    # Pre-expanded / pre-tiled parameters (all lane-dense on the (t, c) axis).
    dbn_gamma = jnp.broadcast_to(
        params["dbn_gamma"].reshape(M, V, 1, C), (M, V, T, C)).reshape(M, V, T * C)
    dbn_beta = jnp.broadcast_to(
        params["dbn_beta"].reshape(M, V, 1, C), (M, V, T, C)).reshape(M, V, T * C)
    # Block-diagonal 1x1-conv weight: kron(I_T, W^T) keeps the conv in T*C lanes.
    wblk = jnp.kron(jnp.eye(T, dtype=jnp.float32), params["conv_w"].T)       # (T*C, T*O)
    conv_b = jnp.tile(params["conv_b"], T)[None, :]                          # (1, T*O)
    bn_gamma = jnp.tile(params["bn_gamma"], T)[None, :]                      # (1, T*O)
    bn_beta = jnp.tile(params["bn_beta"], T)[None, :]                        # (1, T*O)
    # Fused pool + fc operands.
    sel_fc = jnp.tile(params["fc_w"].T, (T, 1))                              # (T*O, n_way)
    pool = jnp.kron(jnp.eye(N, dtype=jnp.float32),
                    jnp.ones((1, M * V), jnp.float32)) / float(M * V * T)    # (N, N*M*V)
    fc_b = params["fc_b"][None, :]

    out = pl.pallas_call(
        functools.partial(_gcn_fused_kernel, n_frames=T),
        out_shape=jax.ShapeDtypeStruct((N, n_way), jnp.float32),
        in_specs=[_VMEM, _VMEM, _SMEM,
                  _VMEM, _VMEM, _VMEM, _VMEM, _VMEM, _VMEM, _VMEM, _VMEM, _VMEM],
        out_specs=_VMEM,
        compiler_params=pltpu.CompilerParams(vmem_limit_bytes=_pick_vmem_limit()),
    )(x_k, adj_t, params["alpha"],
      dbn_gamma, dbn_beta,
      wblk, conv_b, bn_gamma, bn_beta,
      sel_fc, pool, fc_b)
    return out


def gcn_reference(x, adj, params):
    """Pure-JAX replica of the PyTorch forward (training-mode BN)."""
    N, C, T, V, M = x.shape
    xb = jnp.transpose(x, (0, 4, 3, 1, 2)).reshape(N, M * V * C, T)
    mean = xb.mean(axis=(0, 2), keepdims=True)
    var = ((xb - mean) ** 2).mean(axis=(0, 2), keepdims=True)
    xb = ((xb - mean) / jnp.sqrt(var + EPS)
          * params["dbn_gamma"][None, :, None] + params["dbn_beta"][None, :, None])
    xg = xb.reshape(N, M, V, C, T).transpose(0, 1, 3, 4, 2).reshape(N * M, C, T, V)
    adj_e = adj + params["alpha"] * jnp.eye(V, dtype=jnp.float32)
    xw = jnp.einsum('nctv,nvw->nctw', xg, adj_e)
    z = (jnp.einsum('oc,nctv->notv', params["conv_w"], xw)
         + params["conv_b"][None, :, None, None])
    zm = z.mean(axis=(0, 2, 3), keepdims=True)
    zv = ((z - zm) ** 2).mean(axis=(0, 2, 3), keepdims=True)
    y = ((z - zm) / jnp.sqrt(zv + EPS)
         * params["bn_gamma"][None, :, None, None] + params["bn_beta"][None, :, None, None])
    y = y + xw                      # identity residual (in == out channels)
    y = jnp.maximum(y, 0.0)
    pooled = y.reshape(N, M, -1, T * V).mean(axis=3).mean(axis=1)
    return pooled @ params["fc_w"].T + params["fc_b"]


if __name__ == "__main__":
    N, C_in, C_out, T, V, M, n_way = 2, 4, 4, 8, 8, 2, 5
    key = jax.random.PRNGKey(0)
    ks = jax.random.split(key, 12)

    x = jax.random.normal(ks[0], (N, C_in, T, V, M), dtype=jnp.float32)
    adj = 0.3 * jax.random.normal(ks[1], (N * M, V, V), dtype=jnp.float32)

    params = {
        "dbn_gamma": 1.0 + 0.1 * jax.random.normal(ks[2], (M * V * C_in,), jnp.float32),
        "dbn_beta": 0.1 * jax.random.normal(ks[3], (M * V * C_in,), jnp.float32),
        "conv_w": 0.3 * jax.random.normal(ks[4], (C_out, C_in), jnp.float32),
        "conv_b": 0.1 * jax.random.normal(ks[5], (C_out,), jnp.float32),
        "alpha": jnp.array([0.1], dtype=jnp.float32),
        "bn_gamma": 1.0 + 0.1 * jax.random.normal(ks[6], (C_out,), jnp.float32),
        "bn_beta": 0.1 * jax.random.normal(ks[7], (C_out,), jnp.float32),
        "fc_w": 0.3 * jax.random.normal(ks[8], (n_way, C_out), jnp.float32),
        "fc_b": 0.1 * jax.random.normal(ks[9], (n_way,), jnp.float32),
    }

    out = jax.jit(gcn_forward)(x, adj, params)
    out = jax.block_until_ready(out)
    ref = gcn_reference(x, adj, params)

    assert out.shape == (N, n_way), out.shape
    max_err = float(jnp.max(jnp.abs(out - ref)))
    if max_err > 1e-3:
        raise AssertionError(f"mismatch vs reference, max abs err = {max_err}")
    print("KERNEL_OK")
</pallas_src>

<mosaic_0001>
module attributes {stable_mosaic.version = 11 : i64} {
  func.func @_gcn_fused_kernel(%arg0: memref<4x8x32xf32, #tpu.memory_space<vmem>>, %arg1: memref<4x8x8xf32, #tpu.memory_space<vmem>>, %arg2: memref<1xf32, #tpu.memory_space<smem>>, %arg3: memref<2x8x32xf32, #tpu.memory_space<vmem>>, %arg4: memref<2x8x32xf32, #tpu.memory_space<vmem>>, %arg5: memref<32x32xf32, #tpu.memory_space<vmem>>, %arg6: memref<1x32xf32, #tpu.memory_space<vmem>>, %arg7: memref<1x32xf32, #tpu.memory_space<vmem>>, %arg8: memref<1x32xf32, #tpu.memory_space<vmem>>, %arg9: memref<32x5xf32, #tpu.memory_space<vmem>>, %arg10: memref<2x32xf32, #tpu.memory_space<vmem>>, %arg11: memref<1x5xf32, #tpu.memory_space<vmem>>, %arg12: memref<2x5xf32, #tpu.memory_space<vmem>>) attributes {dimension_semantics = [], scalar_prefetch = 0 : i64, scratch_operands = 0 : i64, tpu.core_type = #tpu.core_type<tc>} {
    %c0 = arith.constant 0 : index
    %c0_0 = arith.constant 0 : index
    %c0_1 = arith.constant 0 : index
    %0 = vector.load %arg0[%c0, %c0_0, %c0_1] : memref<4x8x32xf32, #tpu.memory_space<vmem>>, vector<4x8x32xf32>
    %1 = tpu.iota {dimensions = array<i32: 0>} : vector<32x4xi32>
    %c4_i32 = arith.constant 4 : i32
    %c0_i32 = arith.constant 0 : i32
    %2 = arith.cmpi eq, %c4_i32, %c0_i32 : i32
    %c1_i32 = arith.constant 1 : i32
    %3 = arith.select %2, %c1_i32, %c4_i32 : i32
    %4 = vector.broadcast %3 : i32 to vector<32x4xi32>
    %5 = arith.remsi %1, %4 : vector<32x4xi32>
    %c0_i32_2 = arith.constant 0 : i32
    %6 = vector.broadcast %c0_i32_2 : i32 to vector<32x4xi32>
    %7 = arith.cmpi ne, %5, %6 : vector<32x4xi32>
    %c0_i32_3 = arith.constant 0 : i32
    %8 = vector.broadcast %c0_i32_3 : i32 to vector<32x4xi32>
    %9 = arith.cmpi slt, %5, %8 : vector<32x4xi32>
    %c0_i32_4 = arith.constant 0 : i32
    %10 = arith.cmpi slt, %3, %c0_i32_4 : i32
    %11 = vector.broadcast %10 : i1 to vector<32x4xi1>
    %12 = vector.broadcast %11 : vector<32x4xi1> to vector<32x4xi1>
    %13 = arith.xori %9, %12 : vector<32x4xi1>
    %14 = arith.andi %13, %7 : vector<32x4xi1>
    %15 = vector.broadcast %3 : i32 to vector<32x4xi32>
    %16 = arith.addi %5, %15 : vector<32x4xi32>
    %17 = arith.select %14, %16, %5 : vector<32x4xi1>, vector<32x4xi32>
    %18 = tpu.iota {dimensions = array<i32: 1>} : vector<32x4xi32>
    %19 = arith.cmpi eq, %17, %18 : vector<32x4xi32>
    %20 = arith.extui %19 : vector<32x4xi1> to vector<32x4xi32>
    %21 = arith.sitofp %20 : vector<32x4xi32> to vector<32x4xf32>
    %22 = tpu.iota {dimensions = array<i32: 0>} : vector<4x32xi32>
    %23 = tpu.iota {dimensions = array<i32: 1>} : vector<4x32xi32>
    %c4_i32_5 = arith.constant 4 : i32
    %c0_i32_6 = arith.constant 0 : i32
    %24 = arith.cmpi eq, %c4_i32_5, %c0_i32_6 : i32
    %c1_i32_7 = arith.constant 1 : i32
    %25 = arith.select %24, %c1_i32_7, %c4_i32_5 : i32
    %26 = vector.broadcast %25 : i32 to vector<4x32xi32>
    %27 = arith.remsi %23, %26 : vector<4x32xi32>
    %c0_i32_8 = arith.constant 0 : i32
    %28 = vector.broadcast %c0_i32_8 : i32 to vector<4x32xi32>
    %29 = arith.cmpi ne, %27, %28 : vector<4x32xi32>
    %c0_i32_9 = arith.constant 0 : i32
    %30 = vector.broadcast %c0_i32_9 : i32 to vector<4x32xi32>
    %31 = arith.cmpi slt, %27, %30 : vector<4x32xi32>
    %c0_i32_10 = arith.constant 0 : i32
    %32 = arith.cmpi slt, %25, %c0_i32_10 : i32
    %33 = vector.broadcast %32 : i1 to vector<4x32xi1>
    %34 = vector.broadcast %33 : vector<4x32xi1> to vector<4x32xi1>
    %35 = arith.xori %31, %34 : vector<4x32xi1>
    %36 = arith.andi %35, %29 : vector<4x32xi1>
    %37 = vector.broadcast %25 : i32 to vector<4x32xi32>
    %38 = arith.addi %27, %37 : vector<4x32xi32>
    %39 = arith.select %36, %38, %27 : vector<4x32xi1>, vector<4x32xi32>
    %40 = arith.cmpi eq, %22, %39 : vector<4x32xi32>
    %41 = arith.extui %40 : vector<4x32xi1> to vector<4x32xi32>
    %42 = arith.sitofp %41 : vector<4x32xi32> to vector<4x32xf32>
    %cst = arith.constant dense<0.000000e+00> : vector<4x8x4xf32>
    %43 = tpu.matmul %0, %21, %cst {dimension_numbers = #tpu.dot_dimension_numbers<[2], [0], [0, 1], [1], [0, 0, 0, 1, 1, 1], [], []>} : vector<4x8x32xf32>, vector<32x4xf32>, vector<4x8x4xf32> -> vector<4x8x4xf32>
    %44 = vector.shape_cast %43 : vector<4x8x4xf32> to vector<2x2x8x4xf32>
    %cst_11 = arith.constant dense<0.000000e+00> : vector<2x8x4xf32>
    %45 = vector.multi_reduction <add>, %44, %cst_11 [0] : vector<2x2x8x4xf32> to vector<2x8x4xf32>
    %cst_12 = arith.constant 6.250000e-02 : f32
    %46 = vector.broadcast %cst_12 : f32 to vector<2x8x4xf32>
    %47 = arith.mulf %45, %46 : vector<2x8x4xf32>
    %cst_13 = arith.constant dense<0.000000e+00> : vector<2x8x32xf32>
    %48 = tpu.matmul %47, %42, %cst_13 {dimension_numbers = #tpu.dot_dimension_numbers<[2], [0], [0, 1], [1], [0, 0, 0, 1, 1, 1], [], []>} : vector<2x8x4xf32>, vector<4x32xf32>, vector<2x8x32xf32> -> vector<2x8x32xf32>
    %49 = vector.shape_cast %0 : vector<4x8x32xf32> to vector<2x2x8x32xf32>
    %50 = vector.shape_cast %48 : vector<2x8x32xf32> to vector<1x2x8x32xf32>
    %51 = vector.broadcast %50 : vector<1x2x8x32xf32> to vector<2x2x8x32xf32>
    %52 = arith.subf %49, %51 : vector<2x2x8x32xf32>
    %53 = arith.mulf %52, %52 : vector<2x2x8x32xf32>
    %cst_14 = arith.constant dense<0.000000e+00> : vector<2x8x32xf32>
    %54 = vector.multi_reduction <add>, %53, %cst_14 [0] : vector<2x2x8x32xf32> to vector<2x8x32xf32>
    %cst_15 = arith.constant dense<0.000000e+00> : vector<2x8x4xf32>
    %55 = tpu.matmul %54, %21, %cst_15 {dimension_numbers = #tpu.dot_dimension_numbers<[2], [0], [0, 1], [1], [0, 0, 0, 1, 1, 1], [], []>} : vector<2x8x32xf32>, vector<32x4xf32>, vector<2x8x4xf32> -> vector<2x8x4xf32>
    %cst_16 = arith.constant 6.250000e-02 : f32
    %56 = vector.broadcast %cst_16 : f32 to vector<2x8x4xf32>
    %57 = arith.mulf %55, %56 : vector<2x8x4xf32>
    %cst_17 = arith.constant 0.000000e+00 : f32
    %58 = vector.broadcast %cst_17 : f32 to vector<2x8x4xf32>
    %59 = arith.maximumf %57, %58 : vector<2x8x4xf32>
    %cst_18 = arith.constant dense<0.000000e+00> : vector<2x8x32xf32>
    %60 = tpu.matmul %59, %42, %cst_18 {dimension_numbers = #tpu.dot_dimension_numbers<[2], [0], [0, 1], [1], [0, 0, 0, 1, 1, 1], [], []>} : vector<2x8x4xf32>, vector<4x32xf32>, vector<2x8x32xf32> -> vector<2x8x32xf32>
    %c0_19 = arith.constant 0 : index
    %c0_20 = arith.constant 0 : index
    %c0_21 = arith.constant 0 : index
    %61 = vector.load %arg3[%c0_19, %c0_20, %c0_21] : memref<2x8x32xf32, #tpu.memory_space<vmem>>, vector<2x8x32xf32>
    %cst_22 = arith.constant 9.99999974E-6 : f32
    %62 = vector.broadcast %cst_22 : f32 to vector<2x8x32xf32>
    %63 = arith.addf %60, %62 : vector<2x8x32xf32>
    %64 = math.rsqrt %63 : vector<2x8x32xf32>
    %65 = arith.mulf %61, %64 : vector<2x8x32xf32>
    %66 = vector.shape_cast %65 : vector<2x8x32xf32> to vector<1x2x8x32xf32>
    %67 = vector.broadcast %66 : vector<1x2x8x32xf32> to vector<2x2x8x32xf32>
    %68 = arith.mulf %52, %67 : vector<2x2x8x32xf32>
    %c0_23 = arith.constant 0 : index
    %c0_24 = arith.constant 0 : index
    %c0_25 = arith.constant 0 : index
    %69 = vector.load %arg4[%c0_23, %c0_24, %c0_25] : memref<2x8x32xf32, #tpu.memory_space<vmem>>, vector<2x8x32xf32>
    %70 = vector.shape_cast %69 : vector<2x8x32xf32> to vector<1x2x8x32xf32>
    %71 = vector.broadcast %70 : vector<1x2x8x32xf32> to vector<2x2x8x32xf32>
    %72 = arith.addf %68, %71 : vector<2x2x8x32xf32>
    %73 = vector.shape_cast %72 : vector<2x2x8x32xf32> to vector<4x8x32xf32>
    %c0_26 = arith.constant 0 : index
    %74 = memref.load %arg2[%c0_26] : memref<1xf32, #tpu.memory_space<smem>>
    %75 = tpu.iota {dimensions = array<i32: 0>} : vector<8x8xi32>
    %76 = tpu.iota {dimensions = array<i32: 1>} : vector<8x8xi32>
    %77 = arith.cmpi eq, %75, %76 : vector<8x8xi32>
    %78 = arith.extui %77 : vector<8x8xi1> to vector<8x8xi32>
    %79 = arith.sitofp %78 : vector<8x8xi32> to vector<8x8xf32>
    %c0_27 = arith.constant 0 : index
    %c0_28 = arith.constant 0 : index
    %c0_29 = arith.constant 0 : index
    %80 = vector.load %arg1[%c0_27, %c0_28, %c0_29] : memref<4x8x8xf32, #tpu.memory_space<vmem>>, vector<4x8x8xf32>
    %81 = vector.shape_cast %79 : vector<8x8xf32> to vector<1x8x8xf32>
    %82 = vector.broadcast %74 : f32 to vector<1x8x8xf32>
    %83 = arith.mulf %82, %81 : vector<1x8x8xf32>
    %84 = vector.broadcast %83 : vector<1x8x8xf32> to vector<4x8x8xf32>
    %85 = arith.addf %80, %84 : vector<4x8x8xf32>
    %cst_30 = arith.constant dense<0.000000e+00> : vector<4x8x32xf32>
    %86 = tpu.matmul %85, %73, %cst_30 {dimension_numbers = #tpu.dot_dimension_numbers<[2], [1], [1], [2], [0, 0, 0, 1, 1, 2], [0], [0]>} : vector<4x8x8xf32>, vector<4x8x32xf32>, vector<4x8x32xf32> -> vector<4x8x32xf32>
    %c0_31 = arith.constant 0 : index
    %c0_32 = arith.constant 0 : index
    %87 = vector.load %arg5[%c0_31, %c0_32] : memref<32x32xf32, #tpu.memory_space<vmem>>, vector<32x32xf32>
    %cst_33 = arith.constant dense<0.000000e+00> : vector<4x8x32xf32>
    %88 = tpu.matmul %86, %87, %cst_33 {dimension_numbers = #tpu.dot_dimension_numbers<[2], [0], [0, 1], [1], [0, 0, 0, 1, 1, 1], [], []>} : vector<4x8x32xf32>, vector<32x32xf32>, vector<4x8x32xf32> -> vector<4x8x32xf32>
    %c0_34 = arith.constant 0 : index
    %c0_35 = arith.constant 0 : index
    %89 = vector.load %arg6[%c0_34, %c0_35] : memref<1x32xf32, #tpu.memory_space<vmem>>, vector<1x32xf32>
    %90 = vector.shape_cast %89 : vector<1x32xf32> to vector<1x1x32xf32>
    %91 = vector.broadcast %90 : vector<1x1x32xf32> to vector<4x8x32xf32>
    %92 = arith.addf %88, %91 : vector<4x8x32xf32>
    %cst_36 = arith.constant 1.000000e+00 : f32
    %93 = vector.broadcast %cst_36 : f32 to vector<1x8xf32>
    %cst_37 = arith.constant dense<0.000000e+00> : vector<8x32xf32>
    %94 = vector.multi_reduction <add>, %92, %cst_37 [0] : vector<4x8x32xf32> to vector<8x32xf32>
    %cst_38 = arith.constant dense<0.000000e+00> : vector<1x32xf32>
    %95 = tpu.matmul %93, %94, %cst_38 {dimension_numbers = #tpu.dot_dimension_numbers<[1], [0], [0], [1], [0, 0, 1, 1], [], []>} : vector<1x8xf32>, vector<8x32xf32>, vector<1x32xf32> -> vector<1x32xf32>
    %cst_39 = arith.constant dense<0.000000e+00> : vector<1x4xf32>
    %96 = tpu.matmul %95, %21, %cst_39 {dimension_numbers = #tpu.dot_dimension_numbers<[1], [0], [0], [1], [0, 0, 1, 1], [], []>} : vector<1x32xf32>, vector<32x4xf32>, vector<1x4xf32> -> vector<1x4xf32>
    %cst_40 = arith.constant 3.906250e-03 : f32
    %97 = vector.broadcast %cst_40 : f32 to vector<1x4xf32>
    %98 = arith.mulf %96, %97 : vector<1x4xf32>
    %cst_41 = arith.constant dense<0.000000e+00> : vector<1x32xf32>
    %99 = tpu.matmul %98, %42, %cst_41 {dimension_numbers = #tpu.dot_dimension_numbers<[1], [0], [0], [1], [0, 0, 1, 1], [], []>} : vector<1x4xf32>, vector<4x32xf32>, vector<1x32xf32> -> vector<1x32xf32>
    %100 = vector.shape_cast %99 : vector<1x32xf32> to vector<1x1x32xf32>
    %101 = vector.broadcast %100 : vector<1x1x32xf32> to vector<4x8x32xf32>
    %102 = arith.subf %92, %101 : vector<4x8x32xf32>
    %103 = arith.mulf %102, %102 : vector<4x8x32xf32>
    %cst_42 = arith.constant dense<0.000000e+00> : vector<8x32xf32>
    %104 = vector.multi_reduction <add>, %103, %cst_42 [0] : vector<4x8x32xf32> to vector<8x32xf32>
    %cst_43 = arith.constant dense<0.000000e+00> : vector<1x32xf32>
    %105 = tpu.matmul %93, %104, %cst_43 {dimension_numbers = #tpu.dot_dimension_numbers<[1], [0], [0], [1], [0, 0, 1, 1], [], []>} : vector<1x8xf32>, vector<8x32xf32>, vector<1x32xf32> -> vector<1x32xf32>
    %cst_44 = arith.constant dense<0.000000e+00> : vector<1x4xf32>
    %106 = tpu.matmul %105, %21, %cst_44 {dimension_numbers = #tpu.dot_dimension_numbers<[1], [0], [0], [1], [0, 0, 1, 1], [], []>} : vector<1x32xf32>, vector<32x4xf32>, vector<1x4xf32> -> vector<1x4xf32>
    %cst_45 = arith.constant 3.906250e-03 : f32
    %107 = vector.broadcast %cst_45 : f32 to vector<1x4xf32>
    %108 = arith.mulf %106, %107 : vector<1x4xf32>
    %cst_46 = arith.constant 0.000000e+00 : f32
    %109 = vector.broadcast %cst_46 : f32 to vector<1x4xf32>
    %110 = arith.maximumf %108, %109 : vector<1x4xf32>
    %cst_47 = arith.constant 9.99999974E-6 : f32
    %111 = vector.broadcast %cst_47 : f32 to vector<1x4xf32>
    %112 = arith.addf %110, %111 : vector<1x4xf32>
    %113 = math.rsqrt %112 : vector<1x4xf32>
    %cst_48 = arith.constant dense<0.000000e+00> : vector<1x32xf32>
    %114 = tpu.matmul %113, %42, %cst_48 {dimension_numbers = #tpu.dot_dimension_numbers<[1], [0], [0], [1], [0, 0, 1, 1], [], []>} : vector<1x4xf32>, vector<4x32xf32>, vector<1x32xf32> -> vector<1x32xf32>
    %c0_49 = arith.constant 0 : index
    %c0_50 = arith.constant 0 : index
    %115 = vector.load %arg7[%c0_49, %c0_50] : memref<1x32xf32, #tpu.memory_space<vmem>>, vector<1x32xf32>
    %116 = arith.mulf %114, %115 : vector<1x32xf32>
    %117 = vector.shape_cast %116 : vector<1x32xf32> to vector<1x1x32xf32>
    %118 = vector.broadcast %117 : vector<1x1x32xf32> to vector<4x8x32xf32>
    %119 = arith.mulf %102, %118 : vector<4x8x32xf32>
    %c0_51 = arith.constant 0 : index
    %c0_52 = arith.constant 0 : index
    %120 = vector.load %arg8[%c0_51, %c0_52] : memref<1x32xf32, #tpu.memory_space<vmem>>, vector<1x32xf32>
    %121 = vector.shape_cast %120 : vector<1x32xf32> to vector<1x1x32xf32>
    %122 = vector.broadcast %121 : vector<1x1x32xf32> to vector<4x8x32xf32>
    %123 = arith.addf %119, %122 : vector<4x8x32xf32>
    %124 = arith.addf %123, %86 : vector<4x8x32xf32>
    %cst_53 = arith.constant 0.000000e+00 : f32
    %125 = vector.broadcast %cst_53 : f32 to vector<4x8x32xf32>
    %126 = arith.maximumf %124, %125 : vector<4x8x32xf32>
    %c0_54 = arith.constant 0 : index
    %c0_55 = arith.constant 0 : index
    %127 = vector.load %arg9[%c0_54, %c0_55] : memref<32x5xf32, #tpu.memory_space<vmem>>, vector<32x5xf32>
    %cst_56 = arith.constant dense<0.000000e+00> : vector<4x8x5xf32>
    %128 = tpu.matmul %126, %127, %cst_56 {dimension_numbers = #tpu.dot_dimension_numbers<[2], [0], [0, 1], [1], [0, 0, 0, 1, 1, 1], [], []>} : vector<4x8x32xf32>, vector<32x5xf32>, vector<4x8x5xf32> -> vector<4x8x5xf32>
    %129 = vector.shape_cast %128 : vector<4x8x5xf32> to vector<32x5xf32>
    %c0_57 = arith.constant 0 : index
    %c0_58 = arith.constant 0 : index
    %130 = vector.load %arg10[%c0_57, %c0_58] : memref<2x32xf32, #tpu.memory_space<vmem>>, vector<2x32xf32>
    %cst_59 = arith.constant dense<0.000000e+00> : vector<2x5xf32>
    %131 = tpu.matmul %130, %129, %cst_59 {dimension_numbers = #tpu.dot_dimension_numbers<[1], [0], [0], [1], [0, 0, 1, 1], [], []>} : vector<2x32xf32>, vector<32x5xf32>, vector<2x5xf32> -> vector<2x5xf32>
    %c0_60 = arith.constant 0 : index
    %c0_61 = arith.constant 0 : index
    %132 = vector.load %arg11[%c0_60, %c0_61] : memref<1x5xf32, #tpu.memory_space<vmem>>, vector<1x5xf32>
    %133 = vector.broadcast %132 : vector<1x5xf32> to vector<2x5xf32>
    %134 = arith.addf %131, %133 : vector<2x5xf32>
    %c0_62 = arith.constant 0 : index
    %c0_63 = arith.constant 0 : index
    %135 = vector.load %arg12[%c0_62, %c0_63] : memref<2x5xf32, #tpu.memory_space<vmem>>, vector<2x5xf32>
    tpu.vector_store %arg12[%c0_62, %c0_63], %134 {strides = array<i32>} : memref<2x5xf32, #tpu.memory_space<vmem>>, vector<2x5xf32>,
    return
  }
}

</mosaic_0001>

<bundles_post_ra>
// kernel: tile.23
= control target key start
LH: loop header
LB: loop body
LE: loop exit
PB: predicated region body
PF: predicated region fallthrough
CT: control target
= control target key end

     0   :  { %s22_s0 = inlined_call_operand.vmem [shape: f32[4], index: 0, kind: input, shape index: {}]   ;;  %s23_s1 = inlined_call_operand.vmem [shape: f32[8,4], index: 1, kind: output, shape index: {}]  }
   0x1   :  { %v4_v0 = vld [vmem:[%s22_s0] ss:$0 sm:$0xff] }
   0x2   :  { %5 = vst [vmem:[%s23_s1] sm:$0xff] %v4_v0 }

// kernel: tile.24
= control target key start
LH: loop header
LB: loop body
LE: loop exit
PB: predicated region body
PF: predicated region fallthrough
CT: control target
= control target key end

     0   :  { %s67_s10 = smov 28   ;;  %s68_s11 = smov 20   ;;  %vm3_vm0 = vcmask 31744   ;;  %vm9_vm1 = vcmask 261344   ;;  %vm15_vm2 = vcmask 228544   ;;  %vm21_vm3 = vcmask 195744   ;;  %s111_s0 = inlined_call_operand.vmem [shape: f32[8,4], index: 0, kind: input, shape index: {}]   ;;  %s112_s1 = inlined_call_operand.vmem [shape: f32[1,32], index: 1, kind: output, shape index: {}]  }
   0x1   :  { %v53_v0 = vld [vmem:[%s111_s0 + $0x7] sm:$0x1]   ;;  %v55_v1 = vld [vmem:[%s111_s0 + $0x5] sm:$0x1]   ;;  %v54_v2 = vld [vmem:[%s111_s0 + $0x6] sm:$0x1]  }
   0x2   :  { %7 = vrot.lane.b32.xlu0 %v53_v0, %s67_s10  ;;  %19 = vrot.lane.b32.xlu1 %v55_v1, %s68_s11  ;;  %v56_v3 = vld [vmem:[%s111_s0 + $0x4] sm:$0x1]   ;;  %v2_v4 = vld [vmem:[%s111_s0] sm:$0x1]   ;;  %s69_s18 = smov 24   ;;  %s70_s19 = smov 16  }
   0x3   :  { %4 = vst.msk [vmem:[#allocation0] sm:$0x1] %vm3_vm0, %v2_v4   ;;  %v57_v5 = vld [vmem:[%s111_s0 + $0x3] sm:$0x1]   ;;  %v58_v6 = vld [vmem:[%s111_s0 + $0x2] sm:$0x1]  }
   0x4   :  { %s71_s24 = smov 12   ;;  %s72_s25 = smov 8   ;;  %v59_v7 = vld [vmem:[%s111_s0 + $0x1] sm:$0x1]   ;;  %vm27_vm4 = vcmask 162944   ;;  %vm33_vm5 = vcmask 130144  }
   0x5   :  { %s73_s0 = smov 4   ;;  %vm39_vm6 = vcmask 97344   ;;  %vm45_vm7 = vcmask 64544  }
   0x6   :  { %13 = vrot.lane.b32.xlu0 %v54_v2, %s69_s18  ;;  %25 = vrot.lane.b32.xlu1 %v56_v3, %s70_s19 }
   0xa   :  { %31 = vrot.lane.b32.xlu0 %v57_v5, %s71_s24  ;;  %37 = vrot.lane.b32.xlu1 %v58_v6, %s72_s25 }
   0xe   :  { %43 = vrot.lane.b32.xlu0 %v59_v7, %s73_s0 }
  0x74   :  { %v8_v8 = vpop.permute.xlu0 %7   ;;  %v20_v9 = vpop.permute.xlu1 %19  }
  0x75   :  { %10 = vst.msk [vmem:[#allocation0] sm:$0x1] %vm9_vm1, %v8_v8  }
  0x78   :  { %v14_v10 = vpop.permute.xlu0 %13   ;;  %v26_v11 = vpop.permute.xlu1 %25  }
  0x79   :  { %16 = vst.msk [vmem:[#allocation0] sm:$0x1] %vm15_vm2, %v14_v10  }
  0x7a   :  { %22 = vst.msk [vmem:[#allocation0] sm:$0x1] %vm21_vm3, %v20_v9  }
  0x7b   :  { %28 = vst.msk [vmem:[#allocation0] sm:$0x1] %vm27_vm4, %v26_v11  }
  0x7c   :  { %v32_v12 = vpop.permute.xlu0 %31   ;;  %v38_v13 = vpop.permute.xlu1 %37  }
  0x7d   :  { %34 = vst.msk [vmem:[#allocation0] sm:$0x1] %vm33_vm5, %v32_v12  }
  0x7e   :  { %40 = vst.msk [vmem:[#allocation0] sm:$0x1] %vm39_vm6, %v38_v13  }
  0x80   :  { %v44_v14 = vpop.permute.xlu0 %43  }
  0x81   :  { %46 = vst.msk [vmem:[#allocation0] sm:$0x1] %vm45_vm7, %v44_v14  }
  0x88   :  { %v50_v15 = vld [vmem:[#allocation0] sm:$0x1] }
  0x89   :  { %52 = vst [vmem:[%s112_s1] sm:$0x1] %v50_v15 }

// kernel: gcn_forward.1
= control target key start
LH: loop header
LB: loop body
LE: loop exit
PB: predicated region body
PF: predicated region fallthrough
CT: control target
= control target key end

     0   :  { %v47_v0 = vlaneseq  ;;  %vm129_vm0 = vcmask 261120   ;;  %s2307_s0 = inlined_call_operand.vmem [shape: f32[4,8,32], index: 0, kind: input, shape index: {}]   ;;  %s2308_s1 = inlined_call_operand.vmem [shape: f32[4,8,8], index: 1, kind: input, shape index: {}]   ;;  %s2309_s2 = inlined_call_operand.<no memory space> [shape: f32[1], index: 2, kind: input, shape index: {}]   ;;  %s2310_s3 = inlined_call_operand.vmem [shape: f32[2,8,32], index: 3, kind: input, shape index: {}]   ;;  %s2311_s4 = inlined_call_operand.vmem [shape: f32[2,8,32], index: 4, kind: input, shape index: {}]   ;;  %s2312_s5 = inlined_call_operand.vmem [shape: f32[32,32], index: 5, kind: input, shape index: {}]   ;;  %s2313_s6 = inlined_call_operand.vmem [shape: f32[1,32], index: 6, kind: input, shape index: {}]   ;;  %s2314_s7 = inlined_call_operand.vmem [shape: f32[1,32], index: 7, kind: input, shape index: {}]   ;;  %s2315_s8 = inlined_call_operand.vmem [shape: f32[1,32], index: 8, kind: input, shape index: {}]   ;;  %s2316_s9 = inlined_call_operand.vmem [shape: f32[32,5], index: 9, kind: input, shape index: {}]   ;;  %s2317_s10 = inlined_call_operand.vmem [shape: f32[2,32], index: 10, kind: input, shape index: {}]   ;;  %s2318_s11 = inlined_call_operand.vmem [shape: f32[1,5], index: 11, kind: input, shape index: {}]   ;;  %s2319_s12 = inlined_call_operand.hbm [shape: f32[2,5], index: 12, kind: output, shape index: {}]  }
   0x1   :  { %v43_v1 = vld [vmem:[%s2307_s0] sm:$0xff] }
   0x2   :  { %1758 = vmatprep.mubr.msk.f32.mxu0 %vm129_vm0, %v43_v1 }
   0x3   :  { %18 = vsyncpa [#allocation4], 0  ;;  %v2047_v2 = vshrl.u32 %v47_v0, 7  ;;  %v2049_v3 = vand.u32 127, %v47_v0  ;;  %v1972_v12 = vmov 1.0|1.0   ;;  %v525_v60 = vstv %s2309_s2 }
   0x4   :  { %v44_v14 = vld [vmem:[%s2307_s0 + $0x8] sm:$0xff]  ;;  %v45_v15 = vld [vmem:[%s2307_s0 + $0x10] sm:$0xff]  ;;  %v46_v16 = vld [vmem:[%s2307_s0 + $0x18] sm:$0xff]  ;;  %vm242_vm8 = vcmask 1043456   ;;  %v1973_v18 = vmov 0.0   ;;  %vm227_vm9 = vcmask 31744  }
   0x5   :  { %v49_v4 = vadd.s32 8, %v2047_v2  ;;  %v56_v5 = vand.u32 3, %v2047_v2  ;;  %v50_v6 = vadd.s32 16, %v2047_v2  ;;  %v51_v7 = vadd.s32 24, %v2047_v2  ;;  %v421_v58 = vld [vmem:[%s2310_s3 + $0x8] sm:$0xff]  ;;  %v420_v61 = vld [vmem:[%s2310_s3] sm:$0xff] }
   0x6   :  { %v118_v17 = vand.u32 3, %v2049_v3  ;;  %vm1974_vm10 = vmmov 0   ;;  %vm518_vm11 = vcmp.eq.s32.totalorder %v2047_v2, %v2049_v3  ;;  %vm531_vm12 = vcmask 64512   ;;  %s1977_s24 = smov [#allocation3]  }
   0x7   :  { %v63_v8 = vand.u32 3, %v49_v4  ;;  %vm102_vm1 = vcmp.eq.s32.totalorder %v56_v5, %v2049_v3  ;;  %v70_v9 = vand.u32 3, %v50_v6  ;;  %v77_v10 = vand.u32 3, %v51_v7  ;;  %v521_v5 = vld [vmem:[%s2308_s1] sm:$0xff]  ;;  %v522_v6 = vld [vmem:[%s2308_s1 + $0x8] sm:$0xff]  ;;  %s1617_s25 = sshll.u32 %s1977_s24, 4  ;;  %s1618_s25 = int_to_ptr.vmem [resolvable:$true] %s1617_s25 }
   0x8   :  { %vm126_vm7 = vcmp.eq.s32.totalorder %v2047_v2, %v118_v17  ;;  %v1650_v59 = vsel %vm518_vm11, 1.0, %v1973_v18  ;;  %vm1609_vm13 = vcmask 33792   ;;  %s1948_s26 = scalar_lea.vmem %s1618_s25, 32  ;;  %p1953_p1 = scmp.lt.s32.totalorder %s1618_s25, %s1618_s25 }
   0x9   :  { %vm103_vm2 = vcmp.eq.s32.totalorder %v63_v8, %v2049_v3  ;;  %vm104_vm3 = vcmp.eq.s32.totalorder %v70_v9, %v2049_v3  ;;  %vm105_vm4 = vcmp.eq.s32.totalorder %v77_v10, %v2049_v3  ;;  %v2094_v19 = vsel %vm126_vm7, 1.0, %v1973_v18  ;;  %v512_v3 = vld [vmem:[%s2311_s4 + $0x8] sm:$0xff]  ;;  %v511_v8 = vld [vmem:[%s2311_s4] sm:$0xff]  ;;  %p1949_p0 = scmp.ne.s32.totalorder %s1618_s25, %s1948_s26  ;;  %p1954_p2 = scmp.lt.s32.totalorder %s1948_s26, %s1948_s26 }
   0xa   :  { %vm2059_vm5 = vmpackc.low %vm103_vm2, %vm102_vm1  ;;  %1764 = vmatprep.subr.msk.mxu1 %vm242_vm8, %v2094_v19 }
   0xb   :  { %1887 = vmatprep.subr.msk.bf16.mxu0 %vm2059_vm5, %v1972_v12  ;;  %vm2066_vm6 = vmpackc.low %vm105_vm4, %vm104_vm3  ;;  %1765 = vmatpush3.msk.msra.mxu1 %vm242_vm8, %v2094_v19  ;;  %p1955_p3 = por %p1954_p2, %p1953_p1 }
   0xc   :  { %1889 = vmatpush3.bf16.msk.msra.mxu0 %vm2059_vm5, %v1972_v12  ;;  %1895 = vmatprep.subr.msk.bf16.mxu1 %vm2059_vm5, %v1972_v12 }
   0xd   :  { %1891 = vmatprep.subr.msk.bf16.mxu0 %vm2066_vm6, %v1972_v12  ;;  %p1956_p4 = pnand %p1955_p3, %p1949_p0 }
  0x10   :  { %1893 = vmatpush3.bf16.msk.msra.mxu0 %vm2066_vm6, %v1972_v12 }
  0x11   :  { %1785 = vmatprep.subr.mxu0 %v1973_v18 }
  0x13   :  { %1759 = vmatmul.mubr.msk.f32.vlgmr.msra.gmra.mrb[0].mxu0 %vm129_vm0, %v44_v14 }
  0x14   :  { %1761 = vmatprep.mubr.msk.f32.mxu0 %vm129_vm0, %v45_v15 }
  0x17   :  { %1762 = vmatmul.mubr.msk.f32.gmra.mrb[2].mxu0 %vm129_vm0, %v46_v16 }
  0x18   :  { %1787 = vmatprep.mubr.msk.f32.mxu0 %vm1974_vm10, %v1973_v18 }
  0xe6   :  { %v1760_v20 = vpop.f32.mrb[0].mxu0 }
  0xe7   :  { %v208_v21 = vpop.f32.mrb[1].mxu0  ;;  %v231_v23 = vsel %vm227_vm9, %v1760_v20, 0.0  ;;  %v824_v20 = vld [vmem:[%s2312_s5] sm:$0xff] }
  0xe8   :  { %v228_v26 = vsel %vm227_vm9, %v208_v21, 0.0  ;;  %v825_v21 = vld [vmem:[%s2312_s5 + $0x8] sm:$0xff] }
  0xea   :  { %v1763_v22 = vpop.f32.mrb[2].mxu0 }
  0xeb   :  { %v232_v24 = vsel %vm227_vm9, %v1763_v22, 0.0  ;;  %v218_v25 = vpop.f32.mrb[3].mxu0 }
  0xec   :  { %v233_v27 = vadd.f32 %v232_v24, %v231_v23  ;;  %v229_v28 = vsel %vm227_vm9, %v218_v25, 0.0  ;;  %v523_v23 = vld [vmem:[%s2308_s1 + $0x10] sm:$0xff]  ;;  %v524_v24 = vld [vmem:[%s2308_s1 + $0x18] sm:$0xff] }
  0xed   :  { %v230_v29 = vadd.f32 %v229_v28, %v228_v26  ;;  %v1902_v26 = vpack.c.bf16 %v825_v21, %v824_v20  ;;  %v827_v28 = vld [vmem:[%s2312_s5 + $0x18] sm:$0xff] }
  0xee   :  { %v235_v31 = vmul.f32 0.0625, %v233_v27  ;;  %v826_v27 = vld [vmem:[%s2312_s5 + $0x10] sm:$0xff] }
  0xef   :  { %v234_v30 = vmul.f32 0.0625, %v230_v29 }
  0xf1   :  { %1766 = vmatprep.mubr.msk.f32.mxu1 %vm227_vm9, %v234_v30 }
  0xf2   :  { %1767 = vmatmul.mubr.msk.f32.vlgmr.msra.gmra.mrb[0].mxu1 %vm227_vm9, %v235_v31 }
  0xf3   :  { %1897 = vmatpush3.bf16.msk.msra.mxu1 %vm2059_vm5, %v1972_v12 }
  0xf4   :  { %1899 = vmatprep.subr.msk.bf16.mxu1 %vm2066_vm6, %v1972_v12 }
  0xf7   :  { %1901 = vmatpush3.bf16.msk.msra.mxu1 %vm2066_vm6, %v1972_v12 }
  0xf8   :  { %1780 = vmatprep.subr.msk.mxu1 %vm242_vm8, %v2094_v19 }
 0x1c5   :  { %v1768_v32 = vpop.f32.mrb[0].mxu1 }
 0x1c6   :  { %v322_v33 = vsub.f32 %v44_v14, %v1768_v32  ;;  %v324_v34 = vsub.f32 %v46_v16, %v1768_v32  ;;  %v312_v35 = vpop.f32.mrb[1].mxu1  ;;  %v1906_v32 = vpack.c.bf16 %v827_v28, %v826_v27 }
 0x1c7   :  { %v321_v36 = vsub.f32 %v43_v1, %v312_v35  ;;  %v323_v37 = vsub.f32 %v45_v15, %v312_v35  ;;  %v526_v1 = vmul.f32 %v1650_v59, %v525_v60 }
 0x1c8   :  { %v326_v38 = vmul.f32 %v322_v33, %v322_v33  ;;  %v328_v39 = vmul.f32 %v324_v34, %v324_v34 }
 0x1c9   :  { %v325_v40 = vmul.f32 %v321_v36, %v321_v36  ;;  %v327_v41 = vmul.f32 %v323_v37, %v323_v37  ;;  %v527_v15 = vadd.f32 %v526_v1, %v521_v5  ;;  %v528_v16 = vadd.f32 %v526_v1, %v522_v6 }
 0x1ca   :  { %v332_v42 = vsel %vm129_vm0, %v326_v38, 0.0  ;;  %v333_v43 = vsel %vm129_vm0, %v328_v39, 0.0  ;;  %v529_v30 = vadd.f32 %v526_v1, %v523_v23  ;;  %v530_v31 = vadd.f32 %v526_v1, %v524_v24 }
 0x1cb   :  { %v329_v44 = vsel %vm129_vm0, %v325_v40, 0.0  ;;  %v330_v45 = vsel %vm129_vm0, %v327_v41, 0.0  ;;  %v334_v47 = vadd.f32 %v333_v43, %v332_v42  ;;  %v1975_v41 = vmov 0.0|0.0   ;;  %v1655_v42 = vld [vmem:[%s2313_s6] ss:$0 sm:$0xff] }
 0x1cc   :  { %v331_v46 = vadd.f32 %v330_v45, %v329_v44 }
 0x1ce   :  { %1777 = vmatprep.mubr.msk.f32.mxu1 %vm129_vm0, %v331_v46 }
 0x1cf   :  { %1778 = vmatmul.mubr.msk.f32.vlgmr.msra.gmra.mrb[2].mxu1 %vm129_vm0, %v334_v47 }
 0x1d0   :  { %1781 = vmatpush3.msk.msra.mxu1 %vm242_vm8, %v2094_v19 }
 0x1d1   :  { %1790 = vmatprep.subr.mxu1 %v1973_v18 }
 0x2a2   :  { %v1779_v48 = vpop.f32.mrb[2].mxu1 }
 0x2a3   :  { %v417_v49 = vmul.f32 0.0625, %v1779_v48  ;;  %v407_v50 = vpop.f32.mrb[3].mxu1 }
 0x2a4   :  { %v416_v51 = vmul.f32 0.0625, %v407_v50 }
 0x2a5   :  { %v419_v53 = vmax.f32 %v417_v49, 0.0 }
 0x2a6   :  { %v418_v52 = vmax.f32 %v416_v51, 0.0 }
 0x2a8   :  { %1782 = vmatprep.mubr.msk.f32.mxu1 %vm227_vm9, %v418_v52 }
 0x2a9   :  { %1783 = vmatmul.mubr.msk.f32.vlgmr.msra.gmra.mrb[4].mxu1 %vm227_vm9, %v419_v53 }
 0x2aa   :  { %1792 = vmatprep.mubr.msk.f32.mxu1 %vm1974_vm10, %v1973_v18 }
 0x37c   :  { %v1784_v54 = vpop.f32.mrb[4].mxu1 }
 0x37d   :  { %v500_v55 = vadd.f32 1e-05, %v1784_v54  ;;  %v494_v56 = vpop.f32.mrb[5].mxu1 }
 0x37e   :  { %v495_v57 = vadd.f32 1e-05, %v494_v56 }
 0x37f   :  { %1942 = vrsqrt.f32 %v500_v55 }
 0x380   :  { %1944 = vrsqrt.f32 %v495_v57 }
 0x389   :  { %v1943_v62 = vpop.eup %1942 }
 0x38a   :  { %v1945_v63 = vpop.eup %1944  ;;  %v506_v0 = vmul.f32 %v1943_v62, %v421_v58  ;;  %v1976_v58 = vmov 1.0  }
 0x38b   :  { %v505_v4 = vmul.f32 %v1945_v63, %v420_v61 }
 0x38c   :  { %v508_v7 = vmul.f32 %v506_v0, %v322_v33  ;;  %v510_v10 = vmul.f32 %v506_v0, %v324_v34  ;;  %v1161_v0 = vsub.s32 0, %v2047_v2 }
 0x38d   :  { %v507_v9 = vmul.f32 %v505_v4, %v321_v36  ;;  %v509_v17 = vmul.f32 %v505_v4, %v323_v37 }
 0x38e   :  { %v514_v14 = vadd.f32 %v512_v3, %v508_v7  ;;  %v516_v25 = vadd.f32 %v512_v3, %v510_v10 }
 0x38f   :  { %v513_v22 = vadd.f32 %v511_v8, %v507_v9  ;;  %v515_v29 = vadd.f32 %v511_v8, %v509_v17 }
 0x390   :  { %1791 = vmatpush3.msra.mxu1 %v514_v14 }
 0x391   :  { %1786 = vmatpush3.msra.mxu0 %v513_v22  ;;  %1800 = vmatprep.subr.mxu1 %v1973_v18 }
 0x392   :  { %1788 = vmatmul.mubr.msk.f32.vlgmr.msra.gmra.mrb[4].mxu0 %vm531_vm12, %v527_v15  ;;  %1793 = vmatmul.mubr.msk.f32.vlgmr.msra.gmra.mrb[6].mxu1 %vm531_vm12, %v528_v16 }
 0x393   :  { %1795 = vmatprep.subr.mxu0 %v1973_v18  ;;  %1801 = vmatpush3.msra.mxu1 %v516_v25 }
 0x394   :  { %1796 = vmatpush3.msra.mxu0 %v515_v29  ;;  %1797 = vmatprep.mubr.msk.f32.mxu0 %vm1974_vm10, %v1973_v18  ;;  %v1428_v29 = vld [vmem:[%s2316_s9 + $0x8] sm:$0xff] }
 0x395   :  { %1802 = vmatprep.mubr.msk.f32.mxu1 %vm1974_vm10, %v1973_v18  ;;  %1903 = vmatprep.subr.bf16.mxu0 %v1902_v26 }
 0x396   :  { %1798 = vmatmul.mubr.msk.f32.vlgmr.msra.gmra.mrb[6].mxu0 %vm531_vm12, %v529_v30  ;;  %1803 = vmatmul.mubr.msk.f32.vlgmr.msra.gmra.mrb[8].mxu1 %vm531_vm12, %v530_v31  ;;  %v1430_v31 = vld [vmem:[%s2316_s9 + $0x18] sm:$0xff] }
 0x397   :  { %1905 = vmatpush3.bf16.msra.mxu0 %v1902_v26  ;;  %1819 = vmatprep.subr.mxu1 %v1973_v18 }
 0x398   :  { %1907 = vmatprep.subr.bf16.mxu0 %v1906_v32  ;;  %1821 = vmatprep.mubr.msk.f32.mxu1 %vm1974_vm10, %v1973_v18 }
 0x39b   :  { %1909 = vmatpush3.bf16.msra.mxu0 %v1906_v32 }
 0x39c   :  { %1835 = vmatprep.subr.mxu0 %v1973_v18 }
 0x465   :  { %v2192_v33 = vpop.f32.mrb[4].mxu0  ;;  %v2194_v34 = vpop.f32.mrb[6].mxu1 }
 0x466   :  { %1813 = vmatprep.mubr.msk.f32.mxu0 %vm129_vm0, %v2192_v33  ;;  %v1789_v35 = vpop.f32.mrb[5].mxu0  ;;  %v1794_v36 = vpop.f32.mrb[7].mxu1 }
 0x467   :  { %1814 = vmatmul.mubr.msk.f32.vlgmr.msra.gmra.mrb[8].mxu0 %vm129_vm0, %v2194_v34  ;;  %v1398_v35 = vld [vmem:[%s2314_s7] sm:$0x1] }
 0x468   :  { %1836 = vmatpush3.msk.msra.mxu0 %vm242_vm8, %v2094_v19 }
 0x469   :  { %v2202_v37 = vpop.f32.mrb[6].mxu0  ;;  %v2204_v38 = vpop.f32.mrb[8].mxu1  ;;  %1916 = vmatprep.subr.bf16.mxu0 %v1975_v41 }
 0x46a   :  { %1816 = vmatprep.mubr.msk.f32.mxu0 %vm129_vm0, %v2202_v37  ;;  %v1799_v39 = vpop.f32.mrb[7].mxu0  ;;  %v1804_v40 = vpop.f32.mrb[9].mxu1 }
 0x46b   :  { %1817 = vmatmul.mubr.msk.f32.gmra.mrb[10].mxu0 %vm129_vm0, %v2204_v38 }
 0x46c   :  { %1837 = vmatprep.mubr.msk.f32.mxu0 %vm1974_vm10, %v1973_v18 }
 0x53a   :  { %v1815_v43 = vpop.f32.mrb[8].mxu0 }
 0x53b   :  { %v919_v44 = vadd.f32 %v1815_v43, %v1655_v42  ;;  %v913_v45 = vpop.f32.mrb[9].mxu0  ;;  %v1676_v43 = vld [vmem:[%s2315_s8] ss:$0 sm:$0xff] }
 0x53c   :  { %v914_v46 = vadd.f32 %v1655_v42, %v913_v45 }
 0x53d   :  { %v933_v47 = vsel %vm129_vm0, %v919_v44, 0.0 }
 0x53e   :  { %v932_v48 = vsel %vm129_vm0, %v914_v46, 0.0  ;;  %v1818_v49 = vpop.f32.mrb[10].mxu0 }
 0x53f   :  { %v923_v50 = vpop.f32.mrb[11].mxu0  ;;  %v929_v51 = vadd.f32 %v1818_v49, %v1655_v42  ;;  %v934_v53 = vadd.f32 %v933_v47, %v932_v48 }
 0x540   :  { %v924_v52 = vadd.f32 %v1655_v42, %v923_v50 }
 0x541   :  { %v937_v56 = vsel %vm129_vm0, %v929_v51, 0.0 }
 0x542   :  { %v935_v54 = vsel %vm129_vm0, %v924_v52, 0.0 }
 0x543   :  { %v936_v55 = vadd.f32 %v935_v54, %v934_v53 }
 0x545   :  { %v938_v57 = vadd.f32 %v937_v56, %v936_v55 }
 0x547   :  { %1820 = vmatpush3.msra.mxu1 %v938_v57 }
 0x548   :  { %1822 = vmatmul.mubr.msk.f32.vlgmr.msra.gmra.mrb[10].mxu1 %vm531_vm12, %v1976_v58  ;;  %1910 = vmatprep.subr.bf16.mxu1 %v1975_v41 }
 0x549   :  { %1912 = vmatpush3.bf16.msk.msra.mxu1 %vm2059_vm5, %v1972_v12  ;;  %1832 = vmatprep.mubr.msk.f32.mxu1 %vm1974_vm10, %v1973_v18 }
 0x54a   :  { %1913 = vmatprep.subr.bf16.mxu1 %v1975_v41 }
 0x54d   :  { %1915 = vmatpush3.bf16.msk.msra.mxu1 %vm2066_vm6, %v1972_v12 }
 0x54e   :  { %1840 = vmatprep.subr.mxu1 %v1973_v18 }
 0x61b   :  { %v1008_v59 = vpop.f32.mrb[10].mxu1 }
 0x61c   :  { %1833 = vmatmul.mubr.msk.f32.vlgmr.msra.gmra.mrb[12].mxu1 %vm129_vm0, %v1008_v59  ;;  %v1823_v60 = vpop.f32.mrb[11].mxu1 }
 0x61d   :  { %1842 = vmatprep.mubr.msk.f32.mxu1 %vm1974_vm10, %v1973_v18 }
 0x6ef   :  { %v1081_v61 = vpop.f32.mrb[12].mxu1 }
 0x6f0   :  { %v1085_v62 = vmul.f32 0.00390625, %v1081_v61  ;;  %v1834_v63 = vpop.f32.mrb[13].mxu1 }
 0x6f1   :  { %v1681_v63 = vld [vmem:[%s2318_s11] ss:$0 sm:$0xff] }
 0x6f2   :  { %1838 = vmatmul.mubr.msk.f32.vlgmr.msra.gmra.mrb[12].mxu0 %vm227_vm9, %v1085_v62  ;;  %v1528_v62 = vld [vmem:[%s2317_s10] sm:$0x3] }
 0x6f3   :  { %1918 = vmatpush3.bf16.msk.msra.mxu0 %vm2059_vm5, %v1972_v12  ;;  %1853 = vmatprep.mubr.msk.f32.mxu0 %vm1974_vm10, %v1973_v18 }
 0x6f4   :  { %1919 = vmatprep.subr.bf16.mxu0 %v1975_v41 }
 0x6f7   :  { %1921 = vmatpush3.bf16.msk.msra.mxu0 %vm2066_vm6, %v1972_v12 }
 0x6f8   :  { %1930 = vmatprep.subr.bf16.mxu0 %v1975_v41 }
 0x7c5   :  { %v1155_v1 = vpop.f32.mrb[12].mxu0 }
 0x7c6   :  { %v1162_v3 = vrot.slane %v1155_v1, %v1161_v0  ;;  %v1839_v4 = vpop.f32.mrb[13].mxu0 }
 0x7c8   :  { %v1163_v5 = vsub.f32 %v914_v46, %v1162_v3  ;;  %v1164_v6 = vsub.f32 %v919_v44, %v1162_v3  ;;  %v1165_v11 = vsub.f32 %v924_v52, %v1162_v3  ;;  %v1166_v7 = vsub.f32 %v929_v51, %v1162_v3 }
 0x7ca   :  { %v1167_v8 = vmul.f32 %v1163_v5, %v1163_v5  ;;  %v1168_v9 = vmul.f32 %v1164_v6, %v1164_v6  ;;  %v1169_v10 = vmul.f32 %v1165_v11, %v1165_v11  ;;  %v1170_v14 = vmul.f32 %v1166_v7, %v1166_v7 }
 0x7cc   :  { %v1171_v15 = vsel %vm129_vm0, %v1167_v8, 0.0  ;;  %v1172_v13 = vsel %vm129_vm0, %v1168_v9, 0.0  ;;  %v1174_v16 = vsel %vm129_vm0, %v1169_v10, 0.0  ;;  %v1176_v2 = vsel %vm129_vm0, %v1170_v14, 0.0 }
 0x7cd   :  { %v1173_v12 = vadd.f32 %v1172_v13, %v1171_v15 }
 0x7cf   :  { %v1175_v17 = vadd.f32 %v1174_v16, %v1173_v12 }
 0x7d1   :  { %v1177_v20 = vadd.f32 %v1176_v2, %v1175_v17 }
 0x7d3   :  { %1841 = vmatpush3.msra.mxu1 %v1177_v20 }
 0x7d4   :  { %1843 = vmatmul.mubr.msk.f32.vlgmr.msra.gmra.mrb[14].mxu1 %vm531_vm12, %v1976_v58  ;;  %1856 = vmatprep.subr.mxu1 %v1973_v18 }
 0x7d5   :  { %1857 = vmatpush3.msk.msra.mxu1 %vm242_vm8, %v2094_v19  ;;  %1858 = vmatprep.mubr.msk.f32.mxu1 %vm1974_vm10, %v1973_v18  ;;  %v1427_v19 = vld [vmem:[%s2316_s9] sm:$0xff] }
 0x7d6   :  { %v1922_v30 = vpack.c.bf16 %v1428_v29, %v1427_v19 }
 0x7d8   :  { %1923 = vmatprep.subr.bf16.mxu1 %v1922_v30 }
 0x8a7   :  { %v1244_v21 = vpop.f32.mrb[14].mxu1 }
 0x8a8   :  { %1854 = vmatmul.mubr.msk.f32.vlgmr.msra.gmra.mrb[14].mxu0 %vm129_vm0, %v1244_v21  ;;  %v1844_v22 = vpop.f32.mrb[15].mxu1 }
 0x8a9   :  { %1883 = vmatprep.mubr.msk.f32.mxu0 %vm1974_vm10, %v1973_v18  ;;  %v1429_v18 = vld [vmem:[%s2316_s9 + $0x10] sm:$0xff] }
 0x8aa   :  { %v1926_v32 = vpack.c.bf16 %v1430_v31, %v1429_v18 }
 0x97b   :  { %v1317_v23 = vpop.f32.mrb[14].mxu0 }
 0x97c   :  { %v1321_v24 = vmul.f32 0.00390625, %v1317_v23  ;;  %v1855_v25 = vpop.f32.mrb[15].mxu0 }
 0x97e   :  { %v1322_v26 = vmax.f32 %v1321_v24, 0.0 }
 0x980   :  { %v1323_v27 = vadd.f32 1e-05, %v1322_v26 }
 0x982   :  { %1946 = vrsqrt.f32 %v1323_v27 }
 0x98c   :  { %v1947_v28 = vpop.eup %1946 }
 0x98d   :  { %1859 = vmatmul.mubr.msk.f32.vlgmr.msra.gmra.mrb[16].mxu1 %vm227_vm9, %v1947_v28 }
 0x98e   :  { %1925 = vmatpush3.bf16.msra.mxu1 %v1922_v30 }
 0x98f   :  { %1927 = vmatprep.subr.bf16.mxu1 %v1926_v32 }
 0x992   :  { %1929 = vmatpush3.bf16.msra.mxu1 %v1926_v32 }
 0xa60   :  { %v1394_v36 = vpop.f32.mrb[16].mxu1 }
 0xa61   :  { %v1399_v39 = vmul.f32 %v1398_v35, %v1394_v36  ;;  %v1860_v40 = vpop.f32.mrb[17].mxu1 }
 0xa63   :  { %v1403_v42 = vrot.slane %v1399_v39, %v1161_v0 }
 0xa65   :  { %v1404_v44 = vmul.f32 %v1403_v42, %v1163_v5  ;;  %v1405_v45 = vmul.f32 %v1403_v42, %v1164_v6  ;;  %v1406_v46 = vmul.f32 %v1403_v42, %v1165_v11  ;;  %v1407_v47 = vmul.f32 %v1403_v42, %v1166_v7 }
 0xa67   :  { %v1416_v48 = vadd.f32 %v1676_v43, %v1405_v45  ;;  %v1415_v49 = vadd.f32 %v1676_v43, %v1404_v44  ;;  %v1417_v50 = vadd.f32 %v1676_v43, %v1406_v46  ;;  %v1418_v51 = vadd.f32 %v1676_v43, %v1407_v47 }
 0xa69   :  { %v1419_v52 = vadd.f32 %v1415_v49, %v2192_v33  ;;  %v1420_v53 = vadd.f32 %v1416_v48, %v2194_v34  ;;  %v1421_v54 = vadd.f32 %v1417_v50, %v2202_v37  ;;  %v1422_v55 = vadd.f32 %v1418_v51, %v2204_v38 }
 0xa6b   :  { %v1423_v56 = vmax.f32 %v1419_v52, 0.0  ;;  %v1424_v57 = vmax.f32 %v1420_v53, 0.0  ;;  %v1425_v58 = vmax.f32 %v1421_v54, 0.0  ;;  %v1426_v59 = vmax.f32 %v1422_v55, 0.0 }
 0xa6d   :  { %1869 = vmatprep.mubr.msk.f32.mxu1 %vm129_vm0, %v1423_v56 }
 0xa6e   :  { %1870 = vmatmul.mubr.msk.f32.vlgmr.msra.gmra.mrb[18].mxu1 %vm129_vm0, %v1424_v57 }
 0xa6f   :  { %1872 = vmatprep.mubr.msk.f32.mxu1 %vm129_vm0, %v1425_v58 }
 0xa72   :  { %1873 = vmatmul.mubr.msk.f32.gmra.mrb[20].mxu1 %vm129_vm0, %v1426_v59 }
 0xb41   :  { %v1871_v60 = vpop.f32.mrb[18].mxu1 }
 0xb42   :  { %v1509_v33 = vpop.f32.mrb[19].mxu1 }
 0xb43   :  { %v1931_v61 = vpack.c.bf16 %v1871_v60, %v1509_v33 }
 0xb45   :  { %v1874_v34 = vpop.f32.mrb[20].mxu1  ;;  %1932 = vmatpush3.bf16.msra.mxu0 %v1931_v61 }
 0xb46   :  { %v1519_v37 = vpop.f32.mrb[21].mxu1  ;;  %1933 = vmatprep.subr.bf16.mxu0 %v1975_v41 }
 0xb47   :  { %v1934_v38 = vpack.c.bf16 %v1874_v34, %v1519_v37 }
 0xb49   :  { %1935 = vmatpush3.bf16.msra.mxu0 %v1934_v38 }
 0xb4c   :  { %1884 = vmatmul.mubr.msk.f32.vlgmr.msra.gmra.mrb[16].mxu0 %vm129_vm0, %v1528_v62 }
 0xc1f   :  { %v1605_v0 = vpop.f32.mrb[16].mxu0 }
 0xc20   :  { %v1606_v1 = vadd.f32 %v1681_v63, %v1605_v0  ;;  %v1885_v3 = vpop.f32.mrb[17].mxu0 }
 0xc22   :  { %1610 = vst.msk [vmem:[#allocation3] sm:$0x3] %vm1609_vm13, %v1606_v1 }
 0xc23   :  { %1959 = shalt.err (!%p1956_p4)
}
 0xc24   :  { %s1960_s4 = scalar_lea.hbm %s2319_s12, 32 }
 0xc25   :  { %p1961_p5 = scmp.ne.s32.totalorder %s2319_s12, %s1960_s4  ;;  %p1964_p6 = scmp.lt.u32.totalorder %s1960_s4, %s2319_s12 }
 0xc27   :  { %p1966_p7 = pnand %p1964_p6, %p1961_p5 }
 0xc29   :  { %1969 = shalt.err (!%p1966_p7)
}
 0xc2a   :  { %1620 = dma.vmem_to_hbm [thread:$0]  %s1618_s25, 32, %s2319_s12, [#allocation4]  }
 0xc2b   :  { %1970 = dma.done.wait [#allocation4], 32  }
 0xc2c   :  { %1971 = vsyncadd [#allocation4], 4294967264 }
 0xc2d   :  { %1624 = vsyncpa [#allocation4], 1 }

</bundles_post_ra>
